<compile_context>
chip_gen: v6e
topology: v6e:2x2x1
jax: 0.10.0
libtpu: 0.0.40
codegen_flags: <defaults>
</compile_context>

<pallas_src>
import jax
import jax.numpy as jnp
from jax.experimental import pallas as pl
from jax.experimental.pallas import tpu as pltpu

LANE = 128            # lane width: keep the last dim fully lane-dense
MAX_TILE_ROWS = 2048  # 2048*128*4B = 1 MiB/block (f32); ~4 MiB double-buffered in+out


def _zigmoid_kernel(w_ref, x_ref, o_ref):
    # w_ref: (1,) f32 scalar weight in SMEM, resident across the whole grid.
    w = w_ref[0]
    # Compute in f32 regardless of storage dtype; exp goes to the EUP, the
    # mul/add to the VPU — both are free slack under an HBM-bound roofline.
    x = x_ref[...].astype(jnp.float32)
    y = 1.0 / (0.5 + jnp.exp(-w * x))
    o_ref[...] = y.astype(o_ref.dtype)


@jax.jit
def zigmoid_forward(x, weight):
    """Pallas implementation of Zigmoid.forward: 1 / (0.5 + exp(-weight * x))."""
    orig_shape = x.shape
    orig_dtype = x.dtype
    # Match torch float semantics: float inputs keep their dtype, anything
    # else is promoted to f32 on output.
    out_dtype = orig_dtype if jnp.issubdtype(orig_dtype, jnp.floating) else jnp.float32

    flat = x.reshape(-1)
    n = flat.shape[0]

    # Pad the flat length to a multiple of 128 so rows ride the lane axis.
    # (Elided by XLA when n is already lane-aligned — the common case — so no
    # extra HBM pass.)
    pad = (-n) % LANE
    if pad:
        flat = jnp.pad(flat, (0, pad))
    rows = flat.shape[0] // LANE
    x2d = flat.reshape(rows, LANE)

    # Large row tiles amortize the ~0.35 us per-grid-step overhead; clamp to
    # the actual row count for small inputs (full-dim blocks are always legal).
    tile_r = min(MAX_TILE_ROWS, rows)
    grid = (pl.cdiv(rows, tile_r),)

    out = pl.pallas_call(
        _zigmoid_kernel,
        out_shape=jax.ShapeDtypeStruct((rows, LANE), out_dtype),
        grid=grid,
        in_specs=[
            # scalar weight: whole (1,) array in SMEM, loaded once, grid-invariant
            pl.BlockSpec(memory_space=pltpu.MemorySpace.SMEM),
            # data: row-tiled, lane-dense
            pl.BlockSpec((tile_r, LANE), lambda i: (i, 0)),
        ],
        out_specs=pl.BlockSpec((tile_r, LANE), lambda i: (i, 0)),
        compiler_params=pltpu.CompilerParams(
            dimension_semantics=("parallel",)),
    )(weight.astype(jnp.float32), x2d)

    out_flat = out.reshape(-1)
    if pad:
        out_flat = out_flat[:n]
    return out_flat.reshape(orig_shape)


def _reference_forward(x, weight):
    return (1.0 / (0.5 + jnp.exp(-weight[0] * x.astype(jnp.float32)))).astype(x.dtype)


if __name__ == "__main__":
    key = jax.random.PRNGKey(0)
    # Zigmoid is shape-agnostic; (2, 4, 16, 16) = 2048 elements maps to a
    # (16, 128) lane-dense slab with zero padding.
    x = jax.random.normal(key, (2, 4, 16, 16), jnp.float32)
    # reset_parameters(): self.weight.data.fill_(1.0)
    weight = jnp.ones((1,), jnp.float32)

    out = zigmoid_forward(x, weight)
    out = jax.block_until_ready(out)

    ref = _reference_forward(x, weight)
    assert out.shape == x.shape
    assert out.dtype == x.dtype
    assert jnp.allclose(out, ref, atol=1e-5, rtol=1e-5)

    print("KERNEL_OK")
</pallas_src>

<mosaic_0001>
module attributes {stable_mosaic.version = 11 : i64} {
  func.func @_zigmoid_kernel(%arg0: i32, %arg1: memref<1xf32, #tpu.memory_space<smem>>, %arg2: memref<16x128xf32, #tpu.memory_space<vmem>>, %arg3: memref<16x128xf32, #tpu.memory_space<vmem>>) attributes {dimension_semantics = [#tpu.dimension_semantics<parallel>], iteration_bounds = array<i64: 1>, scalar_prefetch = 0 : i64, scratch_operands = 0 : i64, tpu.core_type = #tpu.core_type<tc>, window_params = [{transform_indices = @transform_0, window_bounds = array<i64: 1>}, {transform_indices = @transform_1, window_bounds = array<i64: 16, 128>}, {transform_indices = @transform_2, window_bounds = array<i64: 16, 128>}]} {
    %c0 = arith.constant 0 : index
    %0 = memref.load %arg1[%c0] : memref<1xf32, #tpu.memory_space<smem>>
    %c0_0 = arith.constant 0 : index
    %c0_1 = arith.constant 0 : index
    %1 = vector.load %arg2[%c0_0, %c0_1] : memref<16x128xf32, #tpu.memory_space<vmem>>, vector<16x128xf32>
    %cst = arith.constant 0.000000e+00 : f32
    %2 = arith.subf %cst, %0 : f32
    %3 = vector.broadcast %2 : f32 to vector<16x128xf32>
    %4 = arith.mulf %3, %1 : vector<16x128xf32>
    %5 = math.exp %4 : vector<16x128xf32>
    %cst_2 = arith.constant 5.000000e-01 : f32
    %6 = vector.broadcast %cst_2 : f32 to vector<16x128xf32>
    %7 = arith.addf %6, %5 : vector<16x128xf32>
    %cst_3 = arith.constant 1.000000e+00 : f32
    %8 = vector.broadcast %cst_3 : f32 to vector<16x128xf32>
    %9 = arith.divf %8, %7 : vector<16x128xf32>
    %c0_4 = arith.constant 0 : index
    %c0_5 = arith.constant 0 : index
    %10 = vector.load %arg3[%c0_4, %c0_5] : memref<16x128xf32, #tpu.memory_space<vmem>>, vector<16x128xf32>
    tpu.vector_store %arg3[%c0_4, %c0_5], %9 {strides = array<i32>} : memref<16x128xf32, #tpu.memory_space<vmem>>, vector<16x128xf32>,
    return
  }
  func.func @transform_0(%arg0: i32) -> i32 {
    %c0_i32 = arith.constant 0 : i32
    %c0_i32_0 = arith.constant 0 : i32
    return %c0_i32 : i32
  }
  func.func @transform_1(%arg0: i32) -> (i32, i32) {
    %c0_i32 = arith.constant 0 : i32
    %c0_i32_0 = arith.constant 0 : i32
    return %arg0, %c0_i32 : i32, i32
  }
  func.func @transform_2(%arg0: i32) -> (i32, i32) {
    %c0_i32 = arith.constant 0 : i32
    %c0_i32_0 = arith.constant 0 : i32
    return %arg0, %c0_i32 : i32, i32
  }
}

</mosaic_0001>

<bundles_post_ra>
// kernel: zigmoid_forward.1
= control target key start
LH: loop header
LB: loop body
LE: loop exit
PB: predicated region body
PF: predicated region fallthrough
CT: control target
= control target key end

     0   :  { %s73_s0 = inlined_call_operand.<no memory space> [shape: f32[1], index: 0, kind: input, shape index: {}]   ;;  %s74_s1 = inlined_call_operand.vmem [shape: f32[16,128], index: 1, kind: input, shape index: {}]   ;;  %s75_s2 = inlined_call_operand.vmem [shape: f32[16,128], index: 2, kind: output, shape index: {}]  }
   0x1   :  { %v13_v0 = vld [vmem:[%s74_s1] sm:$0xff]  ;;  %s15_s13 = ssub.f32 0.0, %s73_s0  ;;  %v14_v1 = vld [vmem:[%s74_s1 + $0x8] sm:$0xff] }
   0x3   :  { %v16_v2 = vstv %s15_s13 }
   0x4   :  { %v17_v3 = vmul.f32 %v16_v2, %v13_v0  ;;  %v18_v4 = vmul.f32 %v16_v2, %v14_v1 }
   0x6   :  { %v19_v5 = vmul.f32 1.442695, %v17_v3  ;;  %v21_v6 = vmul.f32 1.442695, %v18_v4 }
   0x8   :  { %35 = vpow2.f32 %v19_v5 }
   0x9   :  { %37 = vpow2.f32 %v21_v6 }
  0x15   :  { %v36_v7 = vpop.eup %35 }
  0x16   :  { %v38_v8 = vpop.eup %37  ;;  %v23_v9 = vadd.f32 0.5, %v36_v7 }
  0x17   :  { %v24_v10 = vadd.f32 0.5, %v38_v8 }
  0x18   :  { %39 = vrcp.f32 %v23_v9 }
  0x19   :  { %41 = vrcp.f32 %v24_v10 }
  0x25   :  { %v40_v11 = vpop.eup %39 }
  0x26   :  { %v42_v12 = vpop.eup %41  ;;  %29 = vst [vmem:[%s75_s2] sm:$0xff] %v40_v11 }
  0x27   :  { %30 = vst [vmem:[%s75_s2 + $0x8] sm:$0xff] %v42_v12 }

</bundles_post_ra>
